<compile_context>
chip_gen: v5e
topology: v5e:2x2
jax: 0.10.0
libtpu: 0.0.40
codegen_flags: <defaults>
</compile_context>

<pallas_src>
import jax
import jax.numpy as jnp
from jax.experimental import pallas as pl
from jax.experimental.pallas import tpu as pltpu


def mlp_kernel(x_ref, w1_ref, b1_ref, w2_ref, b2_ref, w3_ref, b3_ref, o_ref):
    # x_ref: (13, TILE_B) feature-major tile; batch on lanes.
    x = x_ref[...]
    # Layer 1: (13,13) @ (13,TB) + (13,1) -> ReLU
    h1 = jnp.dot(w1_ref[...], x, preferred_element_type=jnp.float32) + b1_ref[...]
    h1 = jnp.maximum(h1, 0.0)
    # Layer 2: (20,13) @ (13,TB) + (20,1) -> ReLU
    h2 = jnp.dot(w2_ref[...], h1, preferred_element_type=jnp.float32) + b2_ref[...]
    h2 = jnp.maximum(h2, 0.0)
    # Layer 3: (2,20) @ (20,TB) + (2,1)  (logits, no activation)
    logits = jnp.dot(w3_ref[...], h2, preferred_element_type=jnp.float32) + b3_ref[...]
    o_ref[...] = logits.astype(o_ref.dtype)


def neural_network_forward(x, params, *, tile_b=1024):
    """Forward pass matching torch semantics: x (B, 13) -> logits (B, 2).

    params: dict with torch-layout weights
        w1 (13,13), b1 (13,1), w2 (20,13), b2 (20,1), w3 (2,20), b3 (2,1).
    tile_b: batch tile (rounded to a multiple of 128, the lane width).
            Default 1024 keeps the double-buffered VMEM footprint < 1 MiB,
            well under the 32 MiB scoped limit on every generation (incl.
            v7x's 64 MiB physical VMEM), while amortizing per-step overhead.
    """
    B, F = x.shape
    assert F == 13, F

    # Round the tile to the 128-lane width and don't exceed (padded) B.
    tile_b = max(128, ((min(tile_b, max(B, 1)) + 127) // 128) * 128)
    n_tiles = pl.cdiv(B, tile_b)
    Bp = n_tiles * tile_b

    # Feature-major layout: batch on lanes.  Pad batch to a tile multiple.
    x_fm = jnp.transpose(x)                       # (13, B)
    if Bp != B:
        x_fm = jnp.pad(x_fm, ((0, 0), (0, Bp - B)))

    resident = lambda i: (0, 0)                   # weights stay VMEM-resident

    out_fm = pl.pallas_call(
        mlp_kernel,
        out_shape=jax.ShapeDtypeStruct((2, Bp), jnp.float32),
        grid_spec=pltpu.PrefetchScalarGridSpec(
            num_scalar_prefetch=0,
            grid=(n_tiles,),
            in_specs=[
                pl.BlockSpec((13, tile_b), lambda i: (0, i)),   # x tile
                pl.BlockSpec((13, 13), resident),               # w1
                pl.BlockSpec((13, 1), resident),                # b1
                pl.BlockSpec((20, 13), resident),               # w2
                pl.BlockSpec((20, 1), resident),                # b2
                pl.BlockSpec((2, 20), resident),                # w3
                pl.BlockSpec((2, 1), resident),                 # b3
            ],
            out_specs=pl.BlockSpec((2, tile_b), lambda i: (0, i)),
        ),
        compiler_params=pltpu.CompilerParams(
            dimension_semantics=("parallel",),    # dual-TC sharding on v7x
        ),
    )(x_fm, params["w1"], params["b1"], params["w2"], params["b2"],
      params["w3"], params["b3"])

    # Back to torch layout (B, 2); drop batch padding.
    return jnp.transpose(out_fm)[:B]


def init_params(key):
    """Deterministic init mimicking torch's default Linear init:
    U(-1/sqrt(fan_in), 1/sqrt(fan_in)); weights kept in (out, in) order,
    biases as (out, 1) columns for the feature-major kernel."""
    def linear_init(k, fan_in, fan_out):
        kw, kb = jax.random.split(k)
        bound = 1.0 / jnp.sqrt(jnp.float32(fan_in))
        w = jax.random.uniform(kw, (fan_out, fan_in), jnp.float32, -bound, bound)
        b = jax.random.uniform(kb, (fan_out, 1), jnp.float32, -bound, bound)
        return w, b

    k1, k2, k3 = jax.random.split(key, 3)
    w1, b1 = linear_init(k1, 13, 13)
    w2, b2 = linear_init(k2, 13, 20)
    w3, b3 = linear_init(k3, 20, 2)
    return dict(w1=w1, b1=b1, w2=w2, b2=b2, w3=w3, b3=b3)


def reference_forward(x, p):
    h1 = jnp.maximum(x @ p["w1"].T + p["b1"].T, 0.0)
    h2 = jnp.maximum(h1 @ p["w2"].T + p["b2"].T, 0.0)
    return h2 @ p["w3"].T + p["b3"].T


if __name__ == "__main__":
    key = jax.random.PRNGKey(0)
    kx, kp = jax.random.split(key)

    # Small demo shapes; B=300 with tile_b=128 exercises the batch grid
    # (3 tiles) and the padding path (300 -> 384).
    B = 300
    x = jax.random.normal(kx, (B, 13), jnp.float32)
    params = init_params(kp)

    out = neural_network_forward(x, params, tile_b=128)
    out = jax.block_until_ready(out)

    ref = reference_forward(x, params)
    assert out.shape == (B, 2), out.shape
    assert jnp.allclose(out, ref, atol=1e-5, rtol=1e-5), "mismatch vs reference"

    print("KERNEL_OK")
</pallas_src>

<mosaic_0001>
module attributes {stable_mosaic.version = 11 : i64} {
  func.func @mlp_kernel(%arg0: i32, %arg1: memref<13x128xf32, #tpu.memory_space<vmem>>, %arg2: memref<13x13xf32, #tpu.memory_space<vmem>>, %arg3: memref<13x1xf32, #tpu.memory_space<vmem>>, %arg4: memref<20x13xf32, #tpu.memory_space<vmem>>, %arg5: memref<20x1xf32, #tpu.memory_space<vmem>>, %arg6: memref<2x20xf32, #tpu.memory_space<vmem>>, %arg7: memref<2x1xf32, #tpu.memory_space<vmem>>, %arg8: memref<2x128xf32, #tpu.memory_space<vmem>>) attributes {dimension_semantics = [#tpu.dimension_semantics<parallel>], iteration_bounds = array<i64: 3>, scalar_prefetch = 0 : i64, scratch_operands = 0 : i64, tpu.core_type = #tpu.core_type<tc>, window_params = [{transform_indices = @transform_0, window_bounds = array<i64: 13, 128>}, {pipeline_mode = #tpu.pipeline_mode<synchronous>, transform_indices = @transform_1, window_bounds = array<i64: 13, 13>}, {pipeline_mode = #tpu.pipeline_mode<synchronous>, transform_indices = @transform_2, window_bounds = array<i64: 13, 1>}, {pipeline_mode = #tpu.pipeline_mode<synchronous>, transform_indices = @transform_3, window_bounds = array<i64: 20, 13>}, {pipeline_mode = #tpu.pipeline_mode<synchronous>, transform_indices = @transform_4, window_bounds = array<i64: 20, 1>}, {pipeline_mode = #tpu.pipeline_mode<synchronous>, transform_indices = @transform_5, window_bounds = array<i64: 2, 20>}, {pipeline_mode = #tpu.pipeline_mode<synchronous>, transform_indices = @transform_6, window_bounds = array<i64: 2, 1>}, {transform_indices = @transform_7, window_bounds = array<i64: 2, 128>}]} {
    %c0 = arith.constant 0 : index
    %c0_0 = arith.constant 0 : index
    %0 = vector.load %arg1[%c0, %c0_0] : memref<13x128xf32, #tpu.memory_space<vmem>>, vector<13x128xf32>
    %c0_1 = arith.constant 0 : index
    %c0_2 = arith.constant 0 : index
    %1 = vector.load %arg2[%c0_1, %c0_2] : memref<13x13xf32, #tpu.memory_space<vmem>>, vector<13x13xf32>
    %cst = arith.constant dense<0.000000e+00> : vector<13x128xf32>
    %2 = tpu.matmul %1, %0, %cst {dimension_numbers = #tpu.dot_dimension_numbers<[1], [0], [0], [1], [0, 0, 1, 1], [], []>} : vector<13x13xf32>, vector<13x128xf32>, vector<13x128xf32> -> vector<13x128xf32>
    %c0_3 = arith.constant 0 : index
    %c0_4 = arith.constant 0 : index
    %3 = vector.load %arg3[%c0_3, %c0_4] : memref<13x1xf32, #tpu.memory_space<vmem>>, vector<13x1xf32>
    %4 = vector.broadcast %3 : vector<13x1xf32> to vector<13x128xf32>
    %5 = arith.addf %2, %4 : vector<13x128xf32>
    %cst_5 = arith.constant 0.000000e+00 : f32
    %6 = vector.broadcast %cst_5 : f32 to vector<13x128xf32>
    %7 = arith.maximumf %5, %6 : vector<13x128xf32>
    %c0_6 = arith.constant 0 : index
    %c0_7 = arith.constant 0 : index
    %8 = vector.load %arg4[%c0_6, %c0_7] : memref<20x13xf32, #tpu.memory_space<vmem>>, vector<20x13xf32>
    %cst_8 = arith.constant dense<0.000000e+00> : vector<20x128xf32>
    %9 = tpu.matmul %8, %7, %cst_8 {dimension_numbers = #tpu.dot_dimension_numbers<[1], [0], [0], [1], [0, 0, 1, 1], [], []>} : vector<20x13xf32>, vector<13x128xf32>, vector<20x128xf32> -> vector<20x128xf32>
    %c0_9 = arith.constant 0 : index
    %c0_10 = arith.constant 0 : index
    %10 = vector.load %arg5[%c0_9, %c0_10] : memref<20x1xf32, #tpu.memory_space<vmem>>, vector<20x1xf32>
    %11 = vector.broadcast %10 : vector<20x1xf32> to vector<20x128xf32>
    %12 = arith.addf %9, %11 : vector<20x128xf32>
    %cst_11 = arith.constant 0.000000e+00 : f32
    %13 = vector.broadcast %cst_11 : f32 to vector<20x128xf32>
    %14 = arith.maximumf %12, %13 : vector<20x128xf32>
    %c0_12 = arith.constant 0 : index
    %c0_13 = arith.constant 0 : index
    %15 = vector.load %arg6[%c0_12, %c0_13] : memref<2x20xf32, #tpu.memory_space<vmem>>, vector<2x20xf32>
    %cst_14 = arith.constant dense<0.000000e+00> : vector<2x128xf32>
    %16 = tpu.matmul %15, %14, %cst_14 {dimension_numbers = #tpu.dot_dimension_numbers<[1], [0], [0], [1], [0, 0, 1, 1], [], []>} : vector<2x20xf32>, vector<20x128xf32>, vector<2x128xf32> -> vector<2x128xf32>
    %c0_15 = arith.constant 0 : index
    %c0_16 = arith.constant 0 : index
    %17 = vector.load %arg7[%c0_15, %c0_16] : memref<2x1xf32, #tpu.memory_space<vmem>>, vector<2x1xf32>
    %18 = vector.broadcast %17 : vector<2x1xf32> to vector<2x128xf32>
    %19 = arith.addf %16, %18 : vector<2x128xf32>
    %c0_17 = arith.constant 0 : index
    %c0_18 = arith.constant 0 : index
    %20 = vector.load %arg8[%c0_17, %c0_18] : memref<2x128xf32, #tpu.memory_space<vmem>>, vector<2x128xf32>
    tpu.vector_store %arg8[%c0_17, %c0_18], %19 {strides = array<i32>} : memref<2x128xf32, #tpu.memory_space<vmem>>, vector<2x128xf32>,
    return
  }
  func.func @transform_0(%arg0: i32) -> (i32, i32) {
    %c0_i32 = arith.constant 0 : i32
    %c0_i32_0 = arith.constant 0 : i32
    return %c0_i32, %arg0 : i32, i32
  }
  func.func @transform_1(%arg0: i32) -> (i32, i32) {
    %c0_i32 = arith.constant 0 : i32
    %c0_i32_0 = arith.constant 0 : i32
    %c0_i32_1 = arith.constant 0 : i32
    return %c0_i32, %c0_i32_0 : i32, i32
  }
  func.func @transform_2(%arg0: i32) -> (i32, i32) {
    %c0_i32 = arith.constant 0 : i32
    %c0_i32_0 = arith.constant 0 : i32
    %c0_i32_1 = arith.constant 0 : i32
    return %c0_i32, %c0_i32_0 : i32, i32
  }
  func.func @transform_3(%arg0: i32) -> (i32, i32) {
    %c0_i32 = arith.constant 0 : i32
    %c0_i32_0 = arith.constant 0 : i32
    %c0_i32_1 = arith.constant 0 : i32
    return %c0_i32, %c0_i32_0 : i32, i32
  }
  func.func @transform_4(%arg0: i32) -> (i32, i32) {
    %c0_i32 = arith.constant 0 : i32
    %c0_i32_0 = arith.constant 0 : i32
    %c0_i32_1 = arith.constant 0 : i32
    return %c0_i32, %c0_i32_0 : i32, i32
  }
  func.func @transform_5(%arg0: i32) -> (i32, i32) {
    %c0_i32 = arith.constant 0 : i32
    %c0_i32_0 = arith.constant 0 : i32
    %c0_i32_1 = arith.constant 0 : i32
    return %c0_i32, %c0_i32_0 : i32, i32
  }
  func.func @transform_6(%arg0: i32) -> (i32, i32) {
    %c0_i32 = arith.constant 0 : i32
    %c0_i32_0 = arith.constant 0 : i32
    %c0_i32_1 = arith.constant 0 : i32
    return %c0_i32, %c0_i32_0 : i32, i32
  }
  func.func @transform_7(%arg0: i32) -> (i32, i32) {
    %c0_i32 = arith.constant 0 : i32
    %c0_i32_0 = arith.constant 0 : i32
    return %c0_i32, %arg0 : i32, i32
  }
}

</mosaic_0001>

<bundles_post_ra>
// kernel: tpu_custom_call.1
= control target key start
LH: loop header
LB: loop body
LE: loop exit
PB: predicated region body
PF: predicated region fallthrough
CT: control target
= control target key end

     0   :  { %12 = vsyncpa [#allocation4], 0  ;;  %s854_s0 = inlined_call_operand.vmem [shape: f32[13,384], index: 0, kind: input, shape index: {}]   ;;  %s855_s1 = inlined_call_operand.vmem [shape: f32[13,13], index: 1, kind: input, shape index: {}]   ;;  %s856_s2 = inlined_call_operand.vmem [shape: f32[13,1], index: 2, kind: input, shape index: {}]   ;;  %s857_s3 = inlined_call_operand.vmem [shape: f32[20,13], index: 3, kind: input, shape index: {}]   ;;  %s858_s4 = inlined_call_operand.vmem [shape: f32[20,1], index: 4, kind: input, shape index: {}]   ;;  %s859_s5 = inlined_call_operand.vmem [shape: f32[2,20], index: 5, kind: input, shape index: {}]   ;;  %s860_s6 = inlined_call_operand.vmem [shape: f32[2,1], index: 6, kind: input, shape index: {}]   ;;  %s861_s7 = inlined_call_operand.hbm [shape: f32[2,384], index: 7, kind: output, shape index: {}]  }
   0x1   :  { %14 = vsyncpa [#allocation4 + $0x1], 0  ;;  %s718_s24 = smov 0   ;;  %s720_s25 = smov 0  }
   0x2   :  { %s722_s26 = smov 0   ;;  %s724_s27 = smov 0  }
   0x3 LB: > { %s546_s28 = sadd.s32 4294967295, %s675_s27   ;;  %s547_s29 = sadd.s32 4294967294, %s675_s27   ;;  %s675_s27 = sphi %s724_s27, %s867_s27   ;;  %s671_s26 = sphi %s722_s26, %s866_s26   ;;  %s667_s25 = sphi %s720_s25, %s865_s25   ;;  %s663_s24 = sphi %s718_s24, %s864_s24  }
   0x4   : > { %s741_s30 = sadd.s32 1, %s675_s27   ;;  %s27_s8 = sadd.s32 1, %s671_s26 }
   0x5   : > { %s24_s9 = ssub.s32 %s675_s27, %s741_s30  ;;  %p34_p0 = scmp.ne.s32.totalorder %s671_s26, %s667_s25 }
   0x6   : > { %p25_p1 = scmp.eq.s32.totalorder %s24_s9, 0  ;;  %p35_p2 = scmp.eq.s32.totalorder %s675_s27, 0 }
   0x7   : > { %p190_p3 = scmp.eq.s32.totalorder %s546_s28, 2  ;;  %p195_p4 = scmp.ne.s32.totalorder %s667_s25, %s663_s24 }
   0x8   : > { %s754_s10 = scalar_select %p25_p1, %s671_s26, %s27_s8  }
   0x9   : > { %p36_p5 = por %p35_p2, %p34_p0  ;;  %p756_p6 = por %p190_p3, %p34_p0 }
   0xa   : > { %p196_p7 = scmp.eq.s32.totalorder %s547_s29, 2  ;;  %p549_p9 = scmp.ge.s32.totalorder %s675_s27, 3 }
   0xc   : > { %p760_p8 = por %p196_p7, %p195_p4  ;;  %230 = sbr.rel (%p549_p9) target bundleno = 23 (0x17), region = 40 }
  0x11   : > { %233 = sbr.rel (!%p36_p5) target bundleno = 23 (0x17), region = 44  ;;  %s235_s13 = sand.u32 (%p36_p5), 1, %s671_s26  }
  0x12   : > { %s551_s14 = sshll.u32 (%p36_p5), %s675_s27, 3  ;;  %s550_s15 = sshll.u32 (%p36_p5), %s235_s13, 4 }
  0x13   : > { %s239_s18 = scalar_lea.vmem (%p36_p5), %s854_s0, %s551_s14  ;;  %s237_s19 = scalar_lea.vmem (%p36_p5), [#allocation2], %s550_s15 }
  0x14   : > { %v270_v0 = vld [vmem:[%s239_s18] sm:$0xff] (%p36_p5)  ;;  %v272_v1 = vld [vmem:[%s239_s18 + $0x18] sm:$0xff] (%p36_p5) }
  0x15   : > { %271 = vst [vmem:[%s237_s19] sm:$0xff] (%p36_p5), %v270_v0 }
  0x16   : > { %273 = vst [vmem:[%s237_s19 + $0x8] sm:$0xff] %v272_v1 }
  0x17 PF: > { %p552_p10 = scmp.ge.s32.totalorder %s675_s27, 1  ;;  %p278_p11 = scmp.lt.s32.totalorder %s675_s27, 4 }
  0x19   : > { %p279_p12 = pnand %p552_p10, %p278_p11 }
  0x1a   : > { %s773_s20 = sand.u32 (!%p279_p12), 1, %s667_s25   ;;  %s565_s22 = sshll.u32 (!%p279_p12), %s546_s28, 1 }
  0x1b   : > { %282 = sbr.rel (%p279_p12) target bundleno = 465 (0x1d1), region = 82  ;;  %s553_s21 = sshll.u32 (!%p279_p12), %s773_s20, 4 }
  0x1c   : > { %s287_s29 = scalar_lea.vmem (!%p279_p12), [#allocation2], %s553_s21  ;;  %s554_s21 = sshll.u32 (!%p279_p12), %s773_s20, 1 }
  0x1d   : > { %s477_s8 = scalar_lea.hbm (!%p279_p12), %s861_s7, %s565_s22  ;;  %s315_s9 = scalar_lea.vmem (!%p279_p12), [#allocation3], %s554_s21 }
  0x1e   : > { %s479_s13 = sshll.u32 (!%p279_p12), %s315_s9, 4  ;;  %s481_s14 = sshll.u32 (!%p279_p12), %s477_s8, 4  ;;  %s480_s13 = int_to_ptr.vmem [resolvable:$true] %s479_s13  ;;  %s482_s14 = int_to_ptr.hbm [resolvable:$true] %s481_s14 }
  0x1f   : > { %s467_s15 = scalar_lea.sflag (!%p279_p12), [#allocation4], %s773_s20  ;;  %s627_s16 = sshra.s32 (!%p279_p12), %s482_s14, 4  ;;  %s628_s16 = int_to_ptr.hbm [resolvable:$true] %s627_s16 }
  0x20   : > { %vm339_vm0 = vcmask 1044480   ;;  %v677_v2 = vmov 0   ;;  %v321_v3 = vld [vmem:[%s856_s2 + $0x8] sm:$0x1f]  ;;  %v316_v5 = vld [vmem:[%s287_s29] sm:$0xff]  ;;  %vm332_vm1 = vcmask 105472   ;;  %p634_p2 = scmp.lt.s32.totalorder %s628_s16, %s861_s7 }
  0x21   : > { %610 = vset.pattern.permute.xlu0 %v677_v2  ;;  %611 = vset.pattern.permute.xlu1 %v677_v2  ;;  %v317_v4 = vld [vmem:[%s287_s29 + $0x8] sm:$0x1f]  ;;  %v318_v6 = vld [vmem:[%s855_s1] sm:$0xff]  ;;  %v373_v9 = vld [vmem:[%s858_s4 + $0x10] sm:$0xf]  ;;  %vm441_vm2 = vcmask 1043456  }
  0x22   : > { %329 = vperm.xlu0 %610, %v321_v3   ;;  %612 = vset.pattern.permute.xlu2 %v677_v2  ;;  %v320_v7 = vld [vmem:[%s856_s2] sm:$0xff]  ;;  %v319_v8 = vld [vmem:[%s855_s1 + $0x8] sm:$0x1f]  ;;  %v370_v23 = vld [vmem:[%s857_s3 + $0x10] sm:$0xf]  ;;  %vm437_vm3 = vcmask 162816  }
  0x23   : > { %555 = vmatpush.msk.msra.mxu0 %vm339_vm0, %v317_v4  ;;  %386 = vperm.xlu1 %611, %v373_v9   ;;  %v371_v10 = vld [vmem:[%s858_s4] sm:$0xff]  ;;  %v372_v12 = vld [vmem:[%s858_s4 + $0x8] sm:$0xff]  ;;  %s629_s17 = scalar_lea.hbm %s628_s16, 2  ;;  %s633_s19 = scalar_lea.hbm %s861_s7, 6 }
  0x24   : > { %376 = vperm.xlu2 %612, %v371_v10   ;;  %v431_v13 = vld [vmem:[%s860_s6] sm:$0x3]  ;;  %v369_v21 = vld [vmem:[%s857_s3 + $0x8] sm:$0xff]  ;;  %p630_p13 = scmp.ne.s32.totalorder %s628_s16, %s629_s17  ;;  %p635_p3 = scmp.lt.s32.totalorder %s633_s19, %s629_s17 }
  0x25   : > { %358 = vmatpush.msra.mxu0 %v316_v5  ;;  %v368_v22 = vld [vmem:[%s857_s3] sm:$0xff] }
  0x26   : > { %556 = vmatmul.msk.f32.vlgmr.msra.gmra.mxu0 %vm332_vm1, %v318_v6  ;;  %v430_v36 = vld [vmem:[%s859_s5] sm:$0x3]  ;;  %p631_p0 = pnand %p630_p13, %p756_p6  ;;  %p636_p4 = por %p635_p3, %p634_p2 }
  0x28   : > { %p632_p1 = pneg %p631_p0 }
  0x2a   : > { %324 = vperm.xlu0 %610, %v320_v7   ;;  %p637_p5 = pnand %p636_p4, %p632_p1 }
  0x2b   : > { %381 = vperm.xlu1 %611, %v372_v12  }
  0x2c   : > { %434 = vperm.xlu2 %612, %v431_v13  }
  0x2e   : > { %557 = vmatmul.msk.f32.gmra.mxu0 %vm332_vm1, %v319_v8 }
  0x7e   : > { %v377_v28 = vpop.permute.xlu2 %376 }
  0x86   : > { %v435_v37 = vpop.permute.xlu2 %434 }
  0x94   : > { %v330_v11 = vpop.permute.xlu0 %329 }
  0x95   : > { %v387_v24 = vpop.permute.xlu1 %386 }
  0x9c   : > { %v325_v15 = vpop.permute.xlu0 %324 }
  0x9d   : > { %v382_v26 = vpop.permute.xlu1 %381 }
  0xa3   : > { %v360_v14 = vpop.f32.mrf.mxu0 }
  0xa4   : > { %v361_v17 = vadd.f32 %v360_v14, %v325_v15 }
  0xa6   : > { %v366_v20 = vmax.f32 %v361_v17, 0.0 }
  0xab   : > { %v363_v16 = vpop.f32.mrf.mxu0 }
  0xac   : > { %v364_v18 = vadd.f32 %v363_v16, %v330_v11 }
  0xae   : > { %v367_v19 = vmax.f32 %v364_v18, 0.0 }
  0xb0   : > { %558 = vmatpush.msk.msra.mxu1 %vm339_vm0, %v367_v19  ;;  %568 = vmatpush.msk.msra.mxu3 %vm339_vm0, %v367_v19 }
  0xb2   : > { %416 = vmatpush.msra.mxu1 %v366_v20  ;;  %569 = vmatpush.msra.mxu3 %v366_v20 }
  0xb3   : > { %560 = vmatmul.msk.f32.vlgmr.msra.gmra.mxu3 %vm332_vm1, %v369_v21  ;;  %559 = vmatmul.msk.f32.vlgmr.msra.gmra.mxu1 %vm332_vm1, %v368_v22 }
  0xbb   : > { %561 = vmatmul.msk.f32.gmra.mxu3 %vm332_vm1, %v370_v23 }
 0x130   : > { %v418_v27 = vpop.f32.mrf.mxu1 }
 0x131   : > { %v419_v32 = vadd.f32 %v418_v27, %v377_v28 }
 0x133   : > { %v427_v35 = vmax.f32 %v419_v32, 0.0 }
 0x136   : > { %v421_v25 = vpop.f32.mrf.mxu3 }
 0x137   : > { %v422_v30 = vadd.f32 %v421_v25, %v382_v26 }
 0x139   : > { %v428_v34 = vmax.f32 %v422_v30, 0.0 }
 0x13e   : > { %v424_v29 = vpop.f32.mrf.mxu3 }
 0x13f   : > { %v425_v31 = vadd.f32 %v424_v29, %v387_v24 }
 0x141   : > { %v429_v33 = vmax.f32 %v425_v31, 0.0 }
 0x143   : > { %562 = vmatpush.msk.msra.mxu2 %vm441_vm2, %v429_v33 }
 0x145   : > { %459 = vmatpush.msra.mxu2 %v428_v34 }
 0x147   : > { %460 = vmatpush.msra.mxu2 %v427_v35 }
 0x148   : > { %563 = vmatmul.msk.f32.vlgmr.msra.gmra.mxu2 %vm437_vm3, %v430_v36 }
 0x1cb   : > { %v462_v38 = vpop.f32.mrf.mxu2 }
 0x1cc   : > { %v463_v39 = vadd.f32 %v462_v38, %v435_v37 }
 0x1ce   : > { %465 = vst [vmem:[%s315_s9] sm:$0x3] %v463_v39 }
 0x1cf   : > { %640 = shalt.err (!%p637_p5)
}
 0x1d0   : > { %570 = dma.vmem_to_hbm [thread:$0]  (%p756_p6), %s480_s13, 32, %s482_s14, %s467_s15  }
 0x1d1 PF: > { %p576_p7 = scmp.ge.s32.totalorder %s675_s27, 2  ;;  %s493_s20 = sand.u32 1, %s663_s24  }
 0x1d2   : > { %s494_s23 = scalar_lea.sflag [#allocation4], %s493_s20 }
 0x1d3   : > { %p573_p9 = pnand %p576_p7, %p760_p8 }
 0x1d5   : > { %p574_p10 = pneg %p573_p9 }
 0x1d7   : > { %658 = dma.done.wait (%p574_p10), %s494_s23, 32  }
 0x1d8   : > { %660 = vsyncadd (%p574_p10), %s494_s23, 4294967264  ;;  %p17_p11 = scmp.ge.s32.totalorder %s741_s30, 5   ;;  %s864_s24 = smov %s667_s25 }
 0x1d9   : > { %s865_s25 = smov %s671_s26  ;;  %s866_s26 = smov %s754_s10 }
 0x1da   : > { %s867_s27 = smov %s741_s30  ;;  %19 = sbr.rel (!%p17_p11) target bundleno = 3 (0x3), region = 126 }
 0x1df   :  { %500 = vsyncpa [#allocation4], 1 }
 0x1e0   :  { %502 = vsyncpa [#allocation4 + $0x1], 1 }

</bundles_post_ra>
